<compile_context>
chip_gen: v6e
topology: v6e:2x2x1
jax: 0.10.0
libtpu: 0.0.40
codegen_flags: <defaults>
</compile_context>

<pallas_src>
import math

import jax
import jax.numpy as jnp
from jax.experimental import pallas as pl
from jax.experimental.pallas import tpu as pltpu

LANE = 128      # TPU lane width; dense head + output padded to this
SUBLANE = 8     # slab segments are 8-row aligned so in-kernel slices are free


def _vmem_spec():
    # Whole-array block resident in VMEM (all shapes here are tiny).
    return pl.BlockSpec(memory_space=pltpu.MemorySpace.VMEM)


def _round_up(n, m):
    return -(-n // m) * m


def _param_layout(nFeat, nhid2, nhid3, nhid4):
    """Row offsets (sublane-aligned) of each segment inside the packed slab."""
    segs = [("w1", nFeat), ("b1", 1), ("w2", nhid2), ("b2", 1),
            ("w3", nhid3), ("b3", 1), ("dw", nhid4), ("db", 1)]
    off, row = {}, 0
    for name, rows in segs:
        off[name] = row
        row += _round_up(rows, SUBLANE)
    return off, row   # (offsets, total rows K)


def pack_params(params):
    """One-time packing: all weights/biases -> single (K, LANE) f32 slab.

    The dense head is zero-padded to LANE output columns here (not per call),
    so the kernel's single HBM store is a full-lane (unmasked) vst.
    """
    w1, b1 = params["gc1"]
    w2, b2 = params["gc2"]
    w3, b3 = params["gc3"]
    dw, db = params["dense"]
    nFeat, nhid2 = w1.shape
    nhid3 = w2.shape[1]
    nhid4 = w3.shape[1]
    nclass = dw.shape[1]

    off, K = _param_layout(nFeat, nhid2, nhid3, nhid4)
    pk = jnp.zeros((K, LANE), jnp.float32)
    pk = pk.at[off["w1"]:off["w1"] + nFeat, :nhid2].set(w1)
    pk = pk.at[off["b1"], :nhid2].set(b1.reshape(-1))
    pk = pk.at[off["w2"]:off["w2"] + nhid2, :nhid3].set(w2)
    pk = pk.at[off["b2"], :nhid3].set(b2.reshape(-1))
    pk = pk.at[off["w3"]:off["w3"] + nhid3, :nhid4].set(w3)
    pk = pk.at[off["b3"], :nhid4].set(b3.reshape(-1))
    pk = pk.at[off["dw"]:off["dw"] + nhid4, :nclass].set(dw)      # lane-padded
    pk = pk.at[off["db"], :nclass].set(db.reshape(-1))            # lane-padded
    return pk


def _cost_estimate(N, nFeat, nhid2, nhid3, nhid4, K):
    flops = 2 * N * (
        nFeat * nhid2 + N * nhid2 +       # gc1
        nhid2 * nhid3 + N * nhid3 +       # gc2
        nhid3 * nhid4 + N * nhid4 +       # gc3
        nhid4 * LANE                      # padded dense head
    )
    bytes_accessed = 4 * (N * nFeat + N * N + K * LANE + N * LANE)
    return pl.CostEstimate(flops=flops, transcendentals=0,
                           bytes_accessed=bytes_accessed)


def build_forward(nFeat, nhid2, nhid3, nhid4, nclass):
    """Builds a jitted forward(packed, x, adj1..adj6) with dims baked in."""
    off, K = _param_layout(nFeat, nhid2, nhid3, nhid4)

    # ------------------------------------------------------------------
    # Fused kernel: 3x GraphConvolution (+ReLU, dropout=identity) + Linear.
    # All parameters arrive in one packed VMEM slab; slices below are static
    # and 8-row aligned, so they are zero-cost views.
    # ------------------------------------------------------------------
    def gcn_basic_kernel(x_ref, adj_ref, pk_ref, out_ref):
        x = x_ref[...]
        adj = adj_ref[...]

        w1 = pk_ref[off["w1"]:off["w1"] + nFeat, :nhid2]
        b1 = pk_ref[off["b1"]:off["b1"] + 1, :nhid2]
        w2 = pk_ref[off["w2"]:off["w2"] + nhid2, :nhid3]
        b2 = pk_ref[off["b2"]:off["b2"] + 1, :nhid3]
        w3 = pk_ref[off["w3"]:off["w3"] + nhid3, :nhid4]
        b3 = pk_ref[off["b3"]:off["b3"] + 1, :nhid4]
        dw = pk_ref[off["dw"]:off["dw"] + nhid4, :]   # (nhid4, LANE), padded
        db = pk_ref[off["db"]:off["db"] + 1, :]       # (1, LANE), padded

        # gc1 + relu  (dropout with training=False is identity)
        h = jnp.dot(x, w1, preferred_element_type=jnp.float32)
        h = jnp.dot(adj, h, preferred_element_type=jnp.float32) + b1
        h = jnp.maximum(h, 0.0)

        # gc2 + relu
        h = jnp.dot(h, w2, preferred_element_type=jnp.float32)
        h = jnp.dot(adj, h, preferred_element_type=jnp.float32) + b2
        h = jnp.maximum(h, 0.0)

        # gc3 (no relu inside gc), then relu before dense head
        h = jnp.dot(h, w3, preferred_element_type=jnp.float32)
        h = jnp.dot(adj, h, preferred_element_type=jnp.float32) + b3
        h = jnp.maximum(h, 0.0)

        # dense head -> lane-dense (N, LANE) slab; padding columns stay zero
        out_ref[...] = (
            jnp.dot(h, dw, preferred_element_type=jnp.float32) + db
        )

    @jax.jit
    def forward(packed, x, adj1, adj2, adj3, adj4, adj5, adj6):
        """Mirrors GCN_basic.forward (only adj5 participates)."""
        del adj1, adj2, adj3, adj4, adj6  # unused by the reference forward
        N = x.shape[0]
        out_padded = pl.pallas_call(
            gcn_basic_kernel,
            out_shape=jax.ShapeDtypeStruct((N, LANE), jnp.float32),
            in_specs=[_vmem_spec()] * 3,
            out_specs=_vmem_spec(),
            cost_estimate=_cost_estimate(N, nFeat, nhid2, nhid3, nhid4, K),
        )(x, adj5, packed)
        # Minor post-call op; keep so the public result shape matches PyTorch.
        return out_padded[:, :nclass]

    return forward


# ----------------------------------------------------------------------------
# Parameter init (matches the PyTorch module's layer shapes / init ranges).
# ----------------------------------------------------------------------------
def _gc_init(key, fan_in, fan_out):
    # GraphConvolution: uniform(-1/sqrt(out), 1/sqrt(out)) for weight & bias.
    stdv = 1.0 / math.sqrt(fan_out)
    k1, k2 = jax.random.split(key)
    w = jax.random.uniform(k1, (fan_in, fan_out), jnp.float32, -stdv, stdv)
    b = jax.random.uniform(k2, (1, fan_out), jnp.float32, -stdv, stdv)
    return w, b


def _lin_init(key, fan_in, fan_out):
    # nn.Linear: uniform(-1/sqrt(in), 1/sqrt(in)); stored as [in, out] = W.T
    bound = 1.0 / math.sqrt(fan_in)
    k1, k2 = jax.random.split(key)
    w = jax.random.uniform(k1, (fan_in, fan_out), jnp.float32, -bound, bound)
    b = jax.random.uniform(k2, (1, fan_out), jnp.float32, -bound, bound)
    return w, b


def init_params(key, nFeat, nhid2, nhid3, nhid4, nclass):
    keys = jax.random.split(key, 4)
    return {
        "gc1": _gc_init(keys[0], nFeat, nhid2),
        "gc2": _gc_init(keys[1], nhid2, nhid3),
        "gc3": _gc_init(keys[2], nhid3, nhid4),
        "dense": _lin_init(keys[3], nhid4, nclass),
    }


# ----------------------------------------------------------------------------
# Pure-JAX reference for a correctness check.
# ----------------------------------------------------------------------------
def reference_forward(params, x, adj5):
    w1, b1 = params["gc1"]
    w2, b2 = params["gc2"]
    w3, b3 = params["gc3"]
    dw, db = params["dense"]
    h = jnp.maximum(adj5 @ (x @ w1) + b1, 0.0)
    h = jnp.maximum(adj5 @ (h @ w2) + b2, 0.0)
    h = adj5 @ (h @ w3) + b3
    h = jnp.maximum(h, 0.0)
    return h @ dw + db


if __name__ == "__main__":
    # Small, deterministic problem sizes consistent with the module.
    N, nFeat = 16, 32
    nhid1, nhid2, nhid3, nhid4 = 64, 32, 32, 32   # nhid1 unused by forward
    nclass = 4

    root = jax.random.PRNGKey(0)
    k_par, k_x, k_adj = jax.random.split(root, 3)

    params = init_params(k_par, nFeat, nhid2, nhid3, nhid4, nclass)
    packed = jax.block_until_ready(pack_params(params))   # one-time packing

    forward = build_forward(nFeat, nhid2, nhid3, nhid4, nclass)

    x = jax.random.normal(k_x, (N, nFeat), jnp.float32)

    adj_keys = jax.random.split(k_adj, 6)

    def make_adj(k):
        a = jax.random.uniform(k, (N, N), jnp.float32)
        a = a + jnp.eye(N, dtype=jnp.float32)
        return a / jnp.sum(a, axis=1, keepdims=True)   # row-normalized dense adj

    adj1, adj2, adj3, adj4, adj5, adj6 = [make_adj(k) for k in adj_keys]

    out = forward(packed, x, adj1, adj2, adj3, adj4, adj5, adj6)
    out = jax.block_until_ready(out)

    assert out.shape == (N, nclass)
    assert bool(jnp.all(jnp.isfinite(out)))

    ref = reference_forward(params, x, adj5)
    assert bool(jnp.allclose(out, ref, atol=1e-5, rtol=1e-5))

    print("KERNEL_OK")
</pallas_src>

<mosaic_0001>
module attributes {stable_mosaic.version = 11 : i64} {
  func.func @gcn_basic_kernel(%arg0: memref<16x32xf32, #tpu.memory_space<vmem>>, %arg1: memref<16x16xf32, #tpu.memory_space<vmem>>, %arg2: memref<160x128xf32, #tpu.memory_space<vmem>>, %arg3: memref<16x128xf32, #tpu.memory_space<vmem>>) attributes {dimension_semantics = [], scalar_prefetch = 0 : i64, scratch_operands = 0 : i64, tpu.core_type = #tpu.core_type<tc>} {
    %c0 = arith.constant 0 : index
    %c0_0 = arith.constant 0 : index
    %0 = vector.load %arg0[%c0, %c0_0] : memref<16x32xf32, #tpu.memory_space<vmem>>, vector<16x32xf32>
    %c0_1 = arith.constant 0 : index
    %c0_2 = arith.constant 0 : index
    %1 = vector.load %arg1[%c0_1, %c0_2] : memref<16x16xf32, #tpu.memory_space<vmem>>, vector<16x16xf32>
    %c0_3 = arith.constant 0 : index
    %c0_4 = arith.constant 0 : index
    %2 = vector.load %arg2[%c0_3, %c0_4] : memref<160x128xf32, #tpu.memory_space<vmem>>, vector<32x32xf32>
    %c32 = arith.constant 32 : index
    %c0_5 = arith.constant 0 : index
    %3 = vector.load %arg2[%c32, %c0_5] : memref<160x128xf32, #tpu.memory_space<vmem>>, vector<1x32xf32>
    %c40 = arith.constant 40 : index
    %c0_6 = arith.constant 0 : index
    %4 = vector.load %arg2[%c40, %c0_6] : memref<160x128xf32, #tpu.memory_space<vmem>>, vector<32x32xf32>
    %c72 = arith.constant 72 : index
    %c0_7 = arith.constant 0 : index
    %5 = vector.load %arg2[%c72, %c0_7] : memref<160x128xf32, #tpu.memory_space<vmem>>, vector<1x32xf32>
    %c80 = arith.constant 80 : index
    %c0_8 = arith.constant 0 : index
    %6 = vector.load %arg2[%c80, %c0_8] : memref<160x128xf32, #tpu.memory_space<vmem>>, vector<32x32xf32>
    %c112 = arith.constant 112 : index
    %c0_9 = arith.constant 0 : index
    %7 = vector.load %arg2[%c112, %c0_9] : memref<160x128xf32, #tpu.memory_space<vmem>>, vector<1x32xf32>
    %c120 = arith.constant 120 : index
    %c0_10 = arith.constant 0 : index
    %8 = vector.load %arg2[%c120, %c0_10] : memref<160x128xf32, #tpu.memory_space<vmem>>, vector<32x128xf32>
    %c152 = arith.constant 152 : index
    %c0_11 = arith.constant 0 : index
    %9 = vector.load %arg2[%c152, %c0_11] : memref<160x128xf32, #tpu.memory_space<vmem>>, vector<1x128xf32>
    %cst = arith.constant dense<0.000000e+00> : vector<16x32xf32>
    %10 = tpu.matmul %0, %2, %cst {dimension_numbers = #tpu.dot_dimension_numbers<[1], [0], [0], [1], [0, 0, 1, 1], [], []>} : vector<16x32xf32>, vector<32x32xf32>, vector<16x32xf32> -> vector<16x32xf32>
    %cst_12 = arith.constant dense<0.000000e+00> : vector<16x32xf32>
    %11 = tpu.matmul %1, %10, %cst_12 {dimension_numbers = #tpu.dot_dimension_numbers<[1], [0], [0], [1], [0, 0, 1, 1], [], []>} : vector<16x16xf32>, vector<16x32xf32>, vector<16x32xf32> -> vector<16x32xf32>
    %12 = vector.broadcast %3 : vector<1x32xf32> to vector<16x32xf32>
    %13 = arith.addf %11, %12 : vector<16x32xf32>
    %cst_13 = arith.constant 0.000000e+00 : f32
    %14 = vector.broadcast %cst_13 : f32 to vector<16x32xf32>
    %15 = arith.maximumf %13, %14 : vector<16x32xf32>
    %cst_14 = arith.constant dense<0.000000e+00> : vector<16x32xf32>
    %16 = tpu.matmul %15, %4, %cst_14 {dimension_numbers = #tpu.dot_dimension_numbers<[1], [0], [0], [1], [0, 0, 1, 1], [], []>} : vector<16x32xf32>, vector<32x32xf32>, vector<16x32xf32> -> vector<16x32xf32>
    %cst_15 = arith.constant dense<0.000000e+00> : vector<16x32xf32>
    %17 = tpu.matmul %1, %16, %cst_15 {dimension_numbers = #tpu.dot_dimension_numbers<[1], [0], [0], [1], [0, 0, 1, 1], [], []>} : vector<16x16xf32>, vector<16x32xf32>, vector<16x32xf32> -> vector<16x32xf32>
    %18 = vector.broadcast %5 : vector<1x32xf32> to vector<16x32xf32>
    %19 = arith.addf %17, %18 : vector<16x32xf32>
    %cst_16 = arith.constant 0.000000e+00 : f32
    %20 = vector.broadcast %cst_16 : f32 to vector<16x32xf32>
    %21 = arith.maximumf %19, %20 : vector<16x32xf32>
    %cst_17 = arith.constant dense<0.000000e+00> : vector<16x32xf32>
    %22 = tpu.matmul %21, %6, %cst_17 {dimension_numbers = #tpu.dot_dimension_numbers<[1], [0], [0], [1], [0, 0, 1, 1], [], []>} : vector<16x32xf32>, vector<32x32xf32>, vector<16x32xf32> -> vector<16x32xf32>
    %cst_18 = arith.constant dense<0.000000e+00> : vector<16x32xf32>
    %23 = tpu.matmul %1, %22, %cst_18 {dimension_numbers = #tpu.dot_dimension_numbers<[1], [0], [0], [1], [0, 0, 1, 1], [], []>} : vector<16x16xf32>, vector<16x32xf32>, vector<16x32xf32> -> vector<16x32xf32>
    %24 = vector.broadcast %7 : vector<1x32xf32> to vector<16x32xf32>
    %25 = arith.addf %23, %24 : vector<16x32xf32>
    %cst_19 = arith.constant 0.000000e+00 : f32
    %26 = vector.broadcast %cst_19 : f32 to vector<16x32xf32>
    %27 = arith.maximumf %25, %26 : vector<16x32xf32>
    %cst_20 = arith.constant dense<0.000000e+00> : vector<16x128xf32>
    %28 = tpu.matmul %27, %8, %cst_20 {dimension_numbers = #tpu.dot_dimension_numbers<[1], [0], [0], [1], [0, 0, 1, 1], [], []>} : vector<16x32xf32>, vector<32x128xf32>, vector<16x128xf32> -> vector<16x128xf32>
    %29 = vector.broadcast %9 : vector<1x128xf32> to vector<16x128xf32>
    %30 = arith.addf %28, %29 : vector<16x128xf32>
    %c0_21 = arith.constant 0 : index
    %c0_22 = arith.constant 0 : index
    %31 = vector.load %arg3[%c0_21, %c0_22] : memref<16x128xf32, #tpu.memory_space<vmem>>, vector<16x128xf32>
    tpu.vector_store %arg3[%c0_21, %c0_22], %30 {strides = array<i32>} : memref<16x128xf32, #tpu.memory_space<vmem>>, vector<16x128xf32>,
    return
  }
}

</mosaic_0001>

<bundles_post_ra>
// kernel: forward.1
= control target key start
LH: loop header
LB: loop body
LE: loop exit
PB: predicated region body
PF: predicated region fallthrough
CT: control target
= control target key end

     0   :  { %8 = vsyncpa [#allocation3], 0  ;;  %s908_s0 = inlined_call_operand.hbm [shape: f32[16,32], index: 0, kind: input, shape index: {}]   ;;  %s909_s1 = inlined_call_operand.hbm [shape: f32[16,16], index: 1, kind: input, shape index: {}]   ;;  %s910_s2 = inlined_call_operand.hbm [shape: f32[160,128], index: 2, kind: input, shape index: {}]   ;;  %s911_s3 = inlined_call_operand.vmem [shape: f32[16,128], index: 3, kind: output, shape index: {}]  }
   0x1   :  { %9 = vsyncpa [#allocation5], 0  ;;  %s854_s12 = smov [#allocation4]   ;;  %s855_s14 = smov [#allocation2]  }
   0x2   :  { %s27_s13 = sshll.u32 %s854_s12, 4  ;;  %s15_s15 = sshll.u32 %s855_s14, 4  ;;  %s28_s13 = int_to_ptr.vmem [resolvable:$true] %s27_s13  ;;  %s16_s15 = int_to_ptr.vmem [resolvable:$true] %s15_s15 }
   0x3   :  { %s798_s16 = scalar_lea.vmem %s28_s13, 256  ;;  %p803_p1 = scmp.lt.s32.totalorder %s28_s13, %s28_s13 }
   0x4   :  { %p799_p0 = scmp.ne.s32.totalorder %s28_s13, %s798_s16  ;;  %p804_p2 = scmp.lt.s32.totalorder %s798_s16, %s798_s16 }
   0x6   :  { %p805_p3 = por %p804_p2, %p803_p1 }
   0x8   :  { %p806_p4 = pnand %p805_p3, %p799_p0 }
   0xa   :  { %809 = shalt.err (!%p806_p4)
}
   0xb   :  { %s856_s17 = smov 128   ;;  %s857_s18 = smov 8  }
   0xc   :  { %33 = dma.hbm_to_vmem [thread:$0]  %s909_s1, 256, %s28_s13, [#allocation5], %s856_s17, %s856_s17, %s857_s18  }
   0xd   :  { %s818_s21 = scalar_lea.vmem %s16_s15, 256  ;;  %p823_p6 = scmp.lt.s32.totalorder %s16_s15, %s16_s15 }
   0xe   :  { %p819_p5 = scmp.ne.s32.totalorder %s16_s15, %s818_s21  ;;  %p824_p7 = scmp.lt.s32.totalorder %s818_s21, %s818_s21 }
  0x10   :  { %p825_p8 = por %p824_p7, %p823_p6 }
  0x12   :  { %p826_p9 = pnand %p825_p8, %p819_p5 }
  0x14   :  { %829 = shalt.err (!%p826_p9)
}
  0x15   :  { %21 = dma.hbm_to_vmem [thread:$0]  %s908_s0, 256, %s16_s15, [#allocation3], %s856_s17, %s856_s17, %s857_s18  }
  0x16   :  { %s858_s24 = smov [#allocation6]  }
  0x17   :  { %s39_s25 = sshll.u32 %s858_s24, 4  ;;  %s40_s25 = int_to_ptr.vmem [resolvable:$true] %s39_s25 }
  0x18   :  { %s838_s26 = scalar_lea.vmem %s40_s25, 2560  ;;  %p843_p11 = scmp.lt.s32.totalorder %s40_s25, %s40_s25 }
  0x19   :  { %p839_p10 = scmp.ne.s32.totalorder %s40_s25, %s838_s26  ;;  %p844_p12 = scmp.lt.s32.totalorder %s838_s26, %s838_s26 }
  0x1b   :  { %p845_p13 = por %p844_p12, %p843_p11 }
  0x1d   :  { %p846_p0 = pnand %p845_p13, %p839_p10 }
  0x1f   :  { %849 = shalt.err (!%p846_p0)
}
  0x20   :  { %45 = dma.hbm_to_vmem [thread:$0]  %s910_s2, 2560, %s40_s25, [#allocation5], %s856_s17, %s856_s17, %s857_s18  }
  0x21   :  { %850 = dma.done.wait [#allocation3], 256  }
  0x22   :  { %851 = vsyncadd [#allocation3], 4294967040 }
  0x23   :  { %852 = dma.done.wait [#allocation5], 2816  }
  0x24   :  { %853 = vsyncadd [#allocation5], 4294964480  ;;  %vm79_vm0 = vcmask 261120   ;;  %v62_v0 = vld [vmem:[#allocation6 + $0x18] sm:$0xff]  ;;  %v61_v1 = vld [vmem:[#allocation6 + $0x10] sm:$0xff]  ;;  %vm165_vm1 = vcmask 130048  }
  0x25   :  { %720 = vmatprep.subr.mxu0 %v62_v0  ;;  %v55_v2 = vld [vmem:[#allocation2] sm:$0xff]  ;;  %v60_v3 = vld [vmem:[#allocation6 + $0x8] sm:$0xff]  ;;  %v57_v6 = vld [vmem:[#allocation4] sm:$0xff] }
  0x26   :  { %721 = vmatpush3.msra.mxu0 %v62_v0  ;;  %728 = vmatprep.mubr.msk.f32.mxu0 %vm79_vm0, %v55_v2  ;;  %v59_v4 = vld [vmem:[#allocation6] sm:$0xff]  ;;  %v56_v5 = vld [vmem:[#allocation2 + $0x8] sm:$0xff]  ;;  %v58_v9 = vld [vmem:[#allocation4 + $0x8] sm:$0xff] }
  0x27   :  { %722 = vmatprep.subr.mxu0 %v61_v1  ;;  %735 = vmatprep.mubr.msk.f32.mxu1 %vm165_vm1, %v57_v6  ;;  %v67_v10 = vld [vmem:[#allocation6 + $0x40] sm:$0xff]  ;;  %v66_v11 = vld [vmem:[#allocation6 + $0x38] sm:$0xff]  ;;  %v65_v12 = vld [vmem:[#allocation6 + $0x30] sm:$0xff] }
  0x28   :  { %723 = vmatpush3.msra.mxu0 %v61_v1  ;;  %v64_v13 = vld [vmem:[#allocation6 + $0x28] sm:$0xff]  ;;  %v668_v14 = vld [vmem:[#allocation6 + $0x20] ss:$0 sm:$0xff]  ;;  %v70_v25 = vld [vmem:[#allocation6 + $0x58] sm:$0xff] }
  0x29   :  { %724 = vmatprep.subr.mxu0 %v60_v3  ;;  %v72_v23 = vld [vmem:[#allocation6 + $0x68] sm:$0xff]  ;;  %v71_v24 = vld [vmem:[#allocation6 + $0x60] sm:$0xff]  ;;  %v69_v26 = vld [vmem:[#allocation6 + $0x50] sm:$0xff] }
  0x2a   :  { %725 = vmatpush3.msra.mxu0 %v60_v3  ;;  %v673_v27 = vld [vmem:[#allocation6 + $0x48] ss:$0 sm:$0xff]  ;;  %v77_v36 = vld [vmem:[#allocation6 + $0x90] sm:$0xff]  ;;  %v75_v38 = vld [vmem:[#allocation6 + $0x80] sm:$0xff] }
  0x2b   :  { %726 = vmatprep.subr.mxu0 %v59_v4  ;;  %v76_v37 = vld [vmem:[#allocation6 + $0x88] sm:$0xff]  ;;  %v74_v39 = vld [vmem:[#allocation6 + $0x78] sm:$0xff]  ;;  %v678_v40 = vld [vmem:[#allocation6 + $0x70] ss:$0 sm:$0xff] }
  0x2c   :  { %727 = vmatpush3.msra.mxu0 %v59_v4  ;;  %v681_v47 = vld [vmem:[#allocation6 + $0x98] ss:$0 sm:$0xff] }
  0x2d   :  { %729 = vmatmul.mubr.msk.f32.vlgmr.msra.gmra.mxu0 %vm79_vm0, %v56_v5 }
  0x2e   :  { %753 = vmatprep.mubr.msk.f32.mxu0 %vm165_vm1, %v57_v6 }
  0xed   :  { %v730_v7 = vpop.f32.mrf.mxu0 }
  0xee   :  { %731 = vmatprep.subr.mxu1 %v730_v7 }
  0xef   :  { %v152_v8 = vpop.f32.mrf.mxu0  ;;  %732 = vmatpush3.msra.mxu1 %v730_v7 }
  0xf0   :  { %733 = vmatprep.subr.mxu1 %v152_v8 }
  0xf1   :  { %734 = vmatpush3.msra.mxu1 %v152_v8 }
  0xf2   :  { %736 = vmatmul.mubr.msk.f32.vlgmr.msra.gmra.mxu1 %vm165_vm1, %v58_v9  ;;  %738 = vmatprep.subr.mxu1 %v67_v10 }
  0xf3   :  { %739 = vmatpush3.msra.mxu1 %v67_v10 }
  0xf4   :  { %740 = vmatprep.subr.mxu1 %v66_v11 }
  0xf5   :  { %741 = vmatpush3.msra.mxu1 %v66_v11 }
  0xf6   :  { %742 = vmatprep.subr.mxu1 %v65_v12 }
  0xf7   :  { %743 = vmatpush3.msra.mxu1 %v65_v12 }
  0xf8   :  { %744 = vmatprep.subr.mxu1 %v64_v13 }
  0xf9   :  { %745 = vmatpush3.msra.mxu1 %v64_v13 }
 0x1b2   :  { %v737_v15 = vpop.f32.mrf.mxu1 }
 0x1b3   :  { %v244_v16 = vadd.f32 %v737_v15, %v668_v14 }
 0x1b4   :  { %v238_v17 = vpop.f32.mrf.mxu1 }
 0x1b5   :  { %v239_v18 = vadd.f32 %v668_v14, %v238_v17  ;;  %v248_v20 = vmax.f32 %v244_v16, 0.0 }
 0x1b7   :  { %v247_v19 = vmax.f32 %v239_v18, 0.0 }
 0x1b9   :  { %746 = vmatprep.mubr.msk.f32.mxu1 %vm79_vm0, %v247_v19 }
 0x1ba   :  { %747 = vmatmul.mubr.msk.f32.vlgmr.msra.gmra.mxu1 %vm79_vm0, %v248_v20 }
 0x1bb   :  { %771 = vmatprep.mubr.msk.f32.mxu1 %vm165_vm1, %v57_v6 }
 0x27a   :  { %v748_v21 = vpop.f32.mrf.mxu1 }
 0x27b   :  { %749 = vmatprep.subr.mxu0 %v748_v21 }
 0x27c   :  { %v321_v22 = vpop.f32.mrf.mxu1  ;;  %750 = vmatpush3.msra.mxu0 %v748_v21 }
 0x27d   :  { %751 = vmatprep.subr.mxu0 %v321_v22 }
 0x27e   :  { %752 = vmatpush3.msra.mxu0 %v321_v22 }
 0x27f   :  { %754 = vmatmul.mubr.msk.f32.vlgmr.msra.gmra.mxu0 %vm165_vm1, %v58_v9  ;;  %756 = vmatprep.subr.mxu0 %v72_v23 }
 0x280   :  { %757 = vmatpush3.msra.mxu0 %v72_v23 }
 0x281   :  { %758 = vmatprep.subr.mxu0 %v71_v24 }
 0x282   :  { %759 = vmatpush3.msra.mxu0 %v71_v24 }
 0x283   :  { %760 = vmatprep.subr.mxu0 %v70_v25 }
 0x284   :  { %761 = vmatpush3.msra.mxu0 %v70_v25 }
 0x285   :  { %762 = vmatprep.subr.mxu0 %v69_v26 }
 0x286   :  { %763 = vmatpush3.msra.mxu0 %v69_v26 }
 0x33f   :  { %v755_v28 = vpop.f32.mrf.mxu0 }
 0x340   :  { %v406_v29 = vadd.f32 %v755_v28, %v673_v27 }
 0x341   :  { %v400_v30 = vpop.f32.mrf.mxu0 }
 0x342   :  { %v401_v31 = vadd.f32 %v673_v27, %v400_v30  ;;  %v410_v33 = vmax.f32 %v406_v29, 0.0 }
 0x344   :  { %v409_v32 = vmax.f32 %v401_v31, 0.0 }
 0x346   :  { %764 = vmatprep.mubr.msk.f32.mxu0 %vm79_vm0, %v409_v32 }
 0x347   :  { %765 = vmatmul.mubr.msk.f32.vlgmr.msra.gmra.mxu0 %vm79_vm0, %v410_v33 }
 0x407   :  { %v766_v34 = vpop.f32.mrf.mxu0 }
 0x408   :  { %767 = vmatprep.subr.mxu1 %v766_v34 }
 0x409   :  { %v483_v35 = vpop.f32.mrf.mxu0  ;;  %768 = vmatpush3.msra.mxu1 %v766_v34 }
 0x40a   :  { %769 = vmatprep.subr.mxu1 %v483_v35 }
 0x40b   :  { %770 = vmatpush3.msra.mxu1 %v483_v35 }
 0x40c   :  { %772 = vmatmul.mubr.msk.f32.vlgmr.msra.gmra.mxu1 %vm165_vm1, %v58_v9  ;;  %774 = vmatprep.subr.mxu1 %v77_v36 }
 0x40d   :  { %775 = vmatpush3.msra.mxu1 %v77_v36 }
 0x40e   :  { %776 = vmatprep.subr.mxu1 %v76_v37 }
 0x40f   :  { %777 = vmatpush3.msra.mxu1 %v76_v37 }
 0x410   :  { %778 = vmatprep.subr.mxu1 %v75_v38 }
 0x411   :  { %779 = vmatpush3.msra.mxu1 %v75_v38 }
 0x412   :  { %780 = vmatprep.subr.mxu1 %v74_v39 }
 0x413   :  { %781 = vmatpush3.msra.mxu1 %v74_v39 }
 0x4cc   :  { %v773_v41 = vpop.f32.mrf.mxu1 }
 0x4cd   :  { %v568_v42 = vadd.f32 %v773_v41, %v678_v40 }
 0x4ce   :  { %v562_v43 = vpop.f32.mrf.mxu1 }
 0x4cf   :  { %v563_v44 = vadd.f32 %v678_v40, %v562_v43  ;;  %v572_v46 = vmax.f32 %v568_v42, 0.0 }
 0x4d1   :  { %v571_v45 = vmax.f32 %v563_v44, 0.0 }
 0x4d3   :  { %782 = vmatprep.mubr.msk.f32.mxu1 %vm79_vm0, %v571_v45 }
 0x4d4   :  { %783 = vmatmul.mubr.msk.f32.vlgmr.msra.gmra.mxu1 %vm79_vm0, %v572_v46 }
 0x594   :  { %v784_v48 = vpop.f32.mrf.mxu1 }
 0x595   :  { %v655_v49 = vadd.f32 %v784_v48, %v681_v47 }
 0x596   :  { %v649_v50 = vpop.f32.mrf.mxu1 }
 0x597   :  { %659 = vst [vmem:[%s911_s3 + $0x8] sm:$0xff] %v655_v49  ;;  %v650_v51 = vadd.f32 %v681_v47, %v649_v50 }
 0x599   :  { %658 = vst [vmem:[%s911_s3] sm:$0xff] %v650_v51 }
 0x59a   :  { %664 = vsyncpa [#allocation3], 1 }
 0x59b   :  { %665 = vsyncpa [#allocation5], 1 }

</bundles_post_ra>
